<compile_context>
chip_gen: v7x
topology: tpu7x:2x2x1
jax: 0.10.0
libtpu: 0.0.40
codegen_flags: <defaults>
</compile_context>

<pallas_src>
import math
import numpy as np
import jax
import jax.numpy as jnp
from jax import lax
from jax.experimental import pallas as pl
from jax.experimental.pallas import tpu as pltpu


def _normalize_params(kernel_size, sigma, dim):
    if isinstance(kernel_size, (int, float)):
        kernel_size = [int(kernel_size)] * dim
    if isinstance(sigma, (int, float)):
        sigma = [float(sigma)] * dim
    return list(kernel_size), list(sigma)


def make_gaussian_taps_1d(kernel_size, sigma, dim=2):
    """Per-axis normalized 1D taps whose outer product equals the module's 2D kernel."""
    kernel_size, sigma = _normalize_params(kernel_size, sigma, dim)
    taps = []
    for size, std in zip(kernel_size, sigma):
        mean = (size - 1) / 2.0
        g = np.arange(size, dtype=np.float64)
        # NOTE: replicates the module's formula exactly (incl. the /(2*std) quirk).
        g = 1.0 / (std * math.sqrt(2.0 * math.pi)) * np.exp(-(((g - mean) / (2.0 * std)) ** 2))
        g = g / g.sum()
        taps.append(g.astype(np.float32))
    return taps


def make_gaussian_weight(channels, kernel_size, sigma, dim=2, dtype=jnp.float32):
    """(C, 1, kH, kW) buffer replicating GaussianSmoothing.__init__ (used for the reference)."""
    kernel_size, sigma = _normalize_params(kernel_size, sigma, dim)
    kernel = jnp.ones((), dtype=jnp.float32)
    meshgrids = jnp.meshgrid(
        *[jnp.arange(size, dtype=jnp.float32) for size in kernel_size], indexing="ij"
    )
    for size, std, mgrid in zip(kernel_size, sigma, meshgrids):
        mean = (size - 1) / 2.0
        kernel = kernel * (
            1.0 / (std * math.sqrt(2.0 * math.pi))
            * jnp.exp(-(((mgrid - mean) / (2.0 * std)) ** 2))
        )
    kernel = kernel / jnp.sum(kernel)
    kernel = kernel.reshape(1, 1, *kernel.shape)
    kernel = jnp.tile(kernel, (channels, 1) + (1,) * (kernel.ndim - 2))
    return kernel.astype(dtype)


def _pick_channel_block(nc, h, w, ho, wo, in_itemsize, out_itemsize):
    """Channel block for the leading (N*C) grid axis.

    Keeps the per-step working set inside a conservative budget (v7x: 64 MiB VMEM/TC,
    32 MiB scoped default) while guaranteeing >= 4 grid steps when N*C allows it, so
    the auto-pipeline can overlap DMA with compute and v7x can shard across both TCs.
    """
    # Per-channel-plane working set: double-buffered I/O blocks + f32 in-kernel values.
    plane_io = 2 * h * w * in_itemsize + 2 * ho * wo * out_itemsize
    plane_f32 = 4 * (h * w + ho * w + ho * wo)          # xv + col + acc
    plane_bytes = plane_io + plane_f32
    budget = 3 * 1024 * 1024                            # conservative per-step budget
    max_cb = max(1, budget // plane_bytes)
    target_steps = min(nc, 4)                           # >=4 steps if we have the channels
    best = 1
    for cb in range(1, nc + 1):
        if nc % cb == 0 and cb <= max_cb and nc // cb >= target_steps:
            best = cb
    return best, plane_bytes


def gaussian_smoothing(x, kernel_size, sigma):
    """Depthwise valid 2D Gaussian smoothing: x (N, C, H, W) -> (N, C, Ho, Wo)."""
    N, C, H, W = x.shape
    taps_h, taps_w = make_gaussian_taps_1d(kernel_size, sigma, dim=2)
    kH, kW = int(taps_h.shape[0]), int(taps_w.shape[0])
    Ho, Wo = H - kH + 1, W - kW + 1
    NC = N * C

    out_dtype = x.dtype
    cb, plane_bytes = _pick_channel_block(
        NC, H, W, Ho, Wo, x.dtype.itemsize, jnp.dtype(out_dtype).itemsize
    )
    grid = (NC // cb,)

    # Scoped-VMEM limit: safe default of 32 MiB (also fixes v5e's 16 MiB default);
    # raise (capped at 64 MiB, the v7x physical size) only if a single-channel block
    # is unavoidably large.
    est = cb * plane_bytes
    vmem_limit = int(max(32 * 1024 * 1024, min(64 * 1024 * 1024, 2 * est)))

    # Bake the taps as compile-time scalar constants (same filter for every channel).
    th = [float(v) for v in taps_h]
    tw = [float(v) for v in taps_w]

    def kernel(x_ref, o_ref):
        # x_ref: (cb, H, W); o_ref: (cb, Ho, Wo).  H = sublanes, W = lanes.
        xv = x_ref[...].astype(jnp.float32)          # cast once, not per tap
        # Pass 1: filter along H (sublane shifts) on the full-width data.
        col = th[0] * xv[:, 0:Ho, :]
        for ki in range(1, kH):
            col = col + th[ki] * xv[:, ki:ki + Ho, :]
        # Pass 2: filter along W (lane shifts) on the already-reduced Ho rows.
        acc = tw[0] * col[:, :, 0:Wo]
        for kj in range(1, kW):
            acc = acc + tw[kj] * col[:, :, kj:kj + Wo]
        o_ref[...] = acc.astype(o_ref.dtype)

    x_r = x.reshape(NC, H, W)  # free: no data movement, no transpose

    out_r = pl.pallas_call(
        kernel,
        out_shape=jax.ShapeDtypeStruct((NC, Ho, Wo), out_dtype),
        grid_spec=pltpu.PrefetchScalarGridSpec(
            num_scalar_prefetch=0,
            grid=grid,
            in_specs=[pl.BlockSpec((cb, H, W), lambda c: (c, 0, 0))],
            out_specs=pl.BlockSpec((cb, Ho, Wo), lambda c: (c, 0, 0)),
        ),
        compiler_params=pltpu.CompilerParams(
            dimension_semantics=("parallel",),
            vmem_limit_bytes=vmem_limit,
        ),
    )(x_r)

    return out_r.reshape(N, C, Ho, Wo)  # free reshape back to NCHW


def _reference(x, weight):
    # Pure-JAX reference: depthwise (grouped) conv, valid padding, stride 1, full precision.
    C = x.shape[1]
    return lax.conv_general_dilated(
        x, weight,
        window_strides=(1, 1), padding="VALID",
        dimension_numbers=("NCHW", "OIHW", "NCHW"),
        feature_group_count=C,
        precision=lax.Precision.HIGHEST,
    )


if __name__ == "__main__":
    N, C, H, W = 2, 4, 16, 16
    kernel_size, sigma = 3, 2.0

    key = jax.random.PRNGKey(0)
    x = jax.random.normal(key, (N, C, H, W), dtype=jnp.float32)

    out = gaussian_smoothing(x, kernel_size, sigma)
    out = jax.block_until_ready(out)

    weight = make_gaussian_weight(C, kernel_size, sigma, dim=2)
    ref = jax.block_until_ready(_reference(x, weight))

    assert out.shape == (N, C, H - kernel_size + 1, W - kernel_size + 1)
    assert jnp.allclose(out, ref, atol=1e-5, rtol=1e-5)

    print("KERNEL_OK")
</pallas_src>

<mosaic_0001>
module attributes {stable_mosaic.version = 11 : i64} {
  func.func @kernel(%arg0: i32, %arg1: memref<2x16x16xf32, #tpu.memory_space<vmem>>, %arg2: memref<2x14x14xf32, #tpu.memory_space<vmem>>) attributes {dimension_semantics = [#tpu.dimension_semantics<parallel>], iteration_bounds = array<i64: 4>, scalar_prefetch = 0 : i64, scratch_operands = 0 : i64, tpu.core_type = #tpu.core_type<tc>, window_params = [{transform_indices = @transform_0, window_bounds = array<i64: 2, 16, 16>}, {transform_indices = @transform_1, window_bounds = array<i64: 2, 14, 14>}]} {
    %c0 = arith.constant 0 : index
    %c0_0 = arith.constant 0 : index
    %c0_1 = arith.constant 0 : index
    %0 = vector.load %arg1[%c0, %c0_0, %c0_1] : memref<2x16x16xf32, #tpu.memory_space<vmem>>, vector<2x16x16xf32>
    %1 = vector.extract_strided_slice %0 {offsets = [0, 0, 0], sizes = [2, 14, 16], strides = [1, 1, 1]} : vector<2x16x16xf32> to vector<2x14x16xf32>
    %cst = arith.constant 0.326318085 : f32
    %2 = vector.broadcast %cst : f32 to vector<2x14x16xf32>
    %3 = arith.mulf %2, %1 : vector<2x14x16xf32>
    %4 = vector.extract_strided_slice %0 {offsets = [0, 1, 0], sizes = [2, 14, 16], strides = [1, 1, 1]} : vector<2x16x16xf32> to vector<2x14x16xf32>
    %cst_2 = arith.constant 0.3473638 : f32
    %5 = vector.broadcast %cst_2 : f32 to vector<2x14x16xf32>
    %6 = arith.mulf %5, %4 : vector<2x14x16xf32>
    %7 = arith.addf %3, %6 : vector<2x14x16xf32>
    %8 = vector.extract_strided_slice %0 {offsets = [0, 2, 0], sizes = [2, 14, 16], strides = [1, 1, 1]} : vector<2x16x16xf32> to vector<2x14x16xf32>
    %cst_3 = arith.constant 0.326318085 : f32
    %9 = vector.broadcast %cst_3 : f32 to vector<2x14x16xf32>
    %10 = arith.mulf %9, %8 : vector<2x14x16xf32>
    %11 = arith.addf %7, %10 : vector<2x14x16xf32>
    %12 = vector.extract_strided_slice %11 {offsets = [0, 0, 0], sizes = [2, 14, 14], strides = [1, 1, 1]} : vector<2x14x16xf32> to vector<2x14x14xf32>
    %cst_4 = arith.constant 0.326318085 : f32
    %13 = vector.broadcast %cst_4 : f32 to vector<2x14x14xf32>
    %14 = arith.mulf %13, %12 : vector<2x14x14xf32>
    %15 = vector.extract_strided_slice %11 {offsets = [0, 0, 1], sizes = [2, 14, 14], strides = [1, 1, 1]} : vector<2x14x16xf32> to vector<2x14x14xf32>
    %cst_5 = arith.constant 0.3473638 : f32
    %16 = vector.broadcast %cst_5 : f32 to vector<2x14x14xf32>
    %17 = arith.mulf %16, %15 : vector<2x14x14xf32>
    %18 = arith.addf %14, %17 : vector<2x14x14xf32>
    %19 = vector.extract_strided_slice %11 {offsets = [0, 0, 2], sizes = [2, 14, 14], strides = [1, 1, 1]} : vector<2x14x16xf32> to vector<2x14x14xf32>
    %cst_6 = arith.constant 0.326318085 : f32
    %20 = vector.broadcast %cst_6 : f32 to vector<2x14x14xf32>
    %21 = arith.mulf %20, %19 : vector<2x14x14xf32>
    %22 = arith.addf %18, %21 : vector<2x14x14xf32>
    %c0_7 = arith.constant 0 : index
    %c0_8 = arith.constant 0 : index
    %c0_9 = arith.constant 0 : index
    %23 = vector.load %arg2[%c0_7, %c0_8, %c0_9] : memref<2x14x14xf32, #tpu.memory_space<vmem>>, vector<2x14x14xf32>
    tpu.vector_store %arg2[%c0_7, %c0_8, %c0_9], %22 {strides = array<i32>} : memref<2x14x14xf32, #tpu.memory_space<vmem>>, vector<2x14x14xf32>,
    return
  }
  func.func @transform_0(%arg0: i32) -> (i32, i32, i32) {
    %c0_i32 = arith.constant 0 : i32
    %c0_i32_0 = arith.constant 0 : i32
    %c0_i32_1 = arith.constant 0 : i32
    return %arg0, %c0_i32, %c0_i32_0 : i32, i32, i32
  }
  func.func @transform_1(%arg0: i32) -> (i32, i32, i32) {
    %c0_i32 = arith.constant 0 : i32
    %c0_i32_0 = arith.constant 0 : i32
    %c0_i32_1 = arith.constant 0 : i32
    return %arg0, %c0_i32, %c0_i32_0 : i32, i32, i32
  }
}

</mosaic_0001>

<bundles_post_ra>
// kernel: tpu_custom_call.1
= control target key start
LH: loop header
LB: loop body
LE: loop exit
PB: predicated region body
PF: predicated region fallthrough
CT: control target
= control target key end

     0   :  { %6 = vsyncpa [#allocation3], 0  ;;  %s570_s0 = inlined_call_operand.hbm [shape: f32[8,16,16], index: 0, kind: input, shape index: {}]   ;;  %s571_s1 = inlined_call_operand.vmem [shape: f32[8,14,14], index: 1, kind: output, shape index: {}]  }
   0x1   :  { %8 = vsyncpa [#allocation3 + $0x1], 0  ;;  %s457_s6 = smov 0   ;;  %s459_s7 = smov 0  }
   0x2   :  { %s461_s8 = smov 0   ;;  %s463_s9 = smov 0  }
   0x3 LB: > { %s315_s10 = sadd.s32 4294967295, %s440_s9   ;;  %s477_s11 = sadd.s32 1, %s440_s9   ;;  %s440_s9 = sphi %s463_s9, %s578_s9   ;;  %s436_s8 = sphi %s461_s8, %s577_s8   ;;  %s432_s7 = sphi %s459_s7, %s576_s7   ;;  %s428_s6 = sphi %s457_s6, %s575_s6  }
   0x4   : > { %s18_s12 = ssub.s32 %s440_s9, %s477_s11  ;;  %s21_s13 = sadd.s32 1, %s436_s8 }
   0x5   : > { %p19_p0 = scmp.eq.s32.totalorder %s18_s12, 0  ;;  %p28_p1 = scmp.ne.s32.totalorder %s436_s8, %s432_s7 }
   0x6   : > { %p29_p2 = scmp.eq.s32.totalorder %s440_s9, 0  ;;  %p34_p3 = scmp.ne.s32.totalorder %s432_s7, %s428_s6 }
   0x7   : > { %s487_s14 = scalar_select %p19_p0, %s436_s8, %s21_s13  }
   0x8   : > { %p30_p4 = por %p29_p2, %p28_p1  ;;  %p35_p5 = scmp.eq.s32.totalorder %s315_s10, 0 }
   0x9   : > { %p339_p6 = scmp.lt.s32.totalorder %s440_s9, 4  ;;  %s84_s16 = sand.u32 1, %s436_s8  }
   0xa   : > { %p492_p7 = por %p35_p5, %p34_p3  ;;  %s319_s17 = sshll.u32 %s84_s16, 5 }
   0xb   : > { %s331_s18 = sshll.u32 %s440_s9, 9  ;;  %s88_s22 = scalar_lea.vmem [#allocation2], %s319_s17 }
   0xc   : > { %s501_s21 = scalar_lea.hbm %s570_s0, %s331_s18  ;;  %s96_s23 = sshll.u32 %s88_s22, 4  ;;  %s503_s23 = int_to_ptr.vmem [resolvable:$true] %s96_s23 }
   0xd   : > { %p505_p8 = pnand %p339_p6, %p30_p4  ;;  %s510_s25 = scalar_lea.sflag [#allocation3], %s84_s16 }
   0xe   : > { %s376_s26 = scalar_lea.hbm %s501_s21, 512  ;;  %s381_s29 = scalar_lea.hbm %s570_s0, 2048 }
   0xf   : > { %p377_p10 = scmp.ne.s32.totalorder %s501_s21, %s376_s26  ;;  %p378_p11 = pneg %p505_p8 }
  0x10   : > { %p382_p0 = scmp.lt.u32.totalorder %s501_s21, %s570_s0  ;;  %p383_p1 = scmp.lt.u32.totalorder %s381_s29, %s376_s26 }
  0x11   : > { %p379_p12 = pnand %p378_p11, %p377_p10  ;;  %p385_p3 = scmp.lt.u32.totalorder %s376_s26, %s501_s21 }
  0x12   : > { %p384_p2 = por %p383_p1, %p382_p0 }
  0x13   : > { %p380_p13 = pneg %p379_p12 }
  0x14   : > { %p386_p4 = por %p385_p3, %p384_p2 }
  0x16   : > { %p387_p5 = pnand %p386_p4, %p380_p13 }
  0x18   : > { %390 = shalt.err (!%p387_p5)
}
  0x19   : > { %s391_s3 = scalar_lea.vmem %s503_s23, 512  ;;  %s442_s4 = smov [#allocation2]  }
  0x1a   : > { %p392_p6 = scmp.ne.s32.totalorder %s503_s23, %s391_s3  ;;  %s396_s5 = sshll.u32 %s442_s4, 4  ;;  %s397_s5 = int_to_ptr.vmem [resolvable:$false] %s396_s5 }
  0x1b   : > { %s398_s6 = scalar_lea.vmem %s397_s5, 1024  ;;  %p399_p9 = scmp.lt.s32.totalorder %s503_s23, %s397_s5 }
  0x1c   : > { %p394_p10 = pnand %p392_p6, %p378_p11  ;;  %p400_p0 = scmp.lt.s32.totalorder %s398_s6, %s391_s3 }
  0x1e   : > { %p395_p12 = pneg %p394_p10  ;;  %p401_p1 = por %p400_p0, %p399_p9 }
  0x20   : > { %p402_p2 = pnand %p401_p1, %p395_p12 }
  0x22   : > { %405 = shalt.err (!%p402_p2)
}
  0x23   : > { %s443_s12 = smov 128   ;;  %s444_s13 = smov 8  }
  0x24   : > { %338 = dma.hbm_to_vmem [thread:$0]  (!%p505_p8), %s501_s21, 512, %s503_s23, %s510_s25, %s443_s12, %s443_s12, %s444_s13  }
  0x25   : > { %p104_p11 = scmp.lt.s32.totalorder %s440_s9, 5  ;;  %p574_p13 = scmp.ge.s32.totalorder %s440_s9, 1 }
  0x27   : > { %p105_p3 = pnand %p574_p13, %p104_p11 }
  0x28   : > { %s110_s16 = sand.u32 (!%p105_p3), 1, %s432_s7  }
  0x29   : > { %108 = sbr.rel (%p105_p3) target bundleno = 191 (0xbf), region = 24  ;;  %s324_s17 = sshll.u32 (!%p105_p3), %s110_s16, 5 }
  0x2a   : > { %s111_s18 = scalar_lea.sflag (!%p105_p3), [#allocation3], %s110_s16  ;;  %s114_s19 = scalar_lea.vmem (!%p105_p3), [#allocation2], %s324_s17 }
  0x30   : > { %423 = dma.done.wait (%p492_p7), %s111_s18, 512  }
  0x31   : > { %425 = vsyncadd (%p492_p7), %s111_s18, 4294966784  ;;  %v145_v0 = vld [vmem:[%s114_s19 + $0x18] sm:$0xff]  ;;  %v143_v1 = vld [vmem:[%s114_s19 + $0x8] sm:$0xff]  ;;  %vm158_vm0 = vcmask 1046528   ;;  %vm177_vm1 = vcmask 1045504   ;;  %s445_s15 = smov 127  }
  0x32   : > { %v142_v2 = vld [vmem:[%s114_s19] sm:$0xff]  ;;  %v149_v3 = vmul.f32 0.3263181, %v145_v0  ;;  %v153_v4 = vmul.f32 0.3473638, %v145_v0  ;;  %v144_v12 = vld [vmem:[%s114_s19 + $0x10] sm:$0xff] }
  0x33   : > { %v147_v5 = vmul.f32 0.3263181, %v143_v1  ;;  %v151_v6 = vmul.f32 0.3473638, %v143_v1  ;;  %v146_v7 = vmul.f32 0.3263181, %v142_v2 }
  0x34   : > { %v150_v8 = vmul.f32 0.3473638, %v142_v2  ;;  %v163_v9 = vrot.slane %v153_v4, 1  ;;  %v182_v10 = vrot.slane %v149_v3, 2  ;;  %v148_v16 = vmul.f32 0.3263181, %v144_v12 }
  0x35   : > { %v179_v11 = vrot.slane %v147_v5, 2  ;;  %v160_v13 = vrot.slane %v151_v6, 1  ;;  %v178_v15 = vrot.slane %v146_v7, 2  ;;  %v152_v18 = vmul.f32 0.3473638, %v144_v12  ;;  %s446_s20 = smov 126  }
  0x36   : > { %v159_v14 = vrot.slane %v150_v8, 1  ;;  %v172_v17 = vadd.f32 %v163_v9, %v149_v3  ;;  %v181_v22 = vrot.slane %v148_v16, 2  ;;  %s325_s21 = sshll.u32 %s315_s10, 1  ;;  %vm242_vm2 = vcmask 111616  }
  0x37   : > { %v170_v19 = vadd.f32 %v160_v13, %v147_v5  ;;  %v180_v21 = vsel %vm177_vm1, %v178_v15, %v179_v11  ;;  %v162_v25 = vrot.slane %v152_v18, 1  ;;  %p136_p7 = scmp.lt.s32.totalorder %s325_s21, 7  ;;  %vm240_vm3 = vcmask 113664  }
  0x38   : > { %v161_v20 = vsel %vm158_vm0, %v159_v14, %v160_v13  ;;  %v191_v23 = vadd.f32 %v182_v10, %v172_v17  ;;  %v183_v30 = vsel %vm177_vm1, %v181_v22, %v182_v10 }
  0x39   : > { %v169_v24 = vadd.f32 %v161_v20, %v146_v7  ;;  %v189_v26 = vadd.f32 %v179_v11, %v170_v19  ;;  %v164_v29 = vsel %vm158_vm0, %v162_v25, %v163_v9  ;;  %s580_s21 = smov (!%p136_p7, %s325_s21), 7 }
  0x3a   : > { %v199_v27 = vmul.f32 0.3473638, %v191_v23  ;;  %v171_v32 = vadd.f32 %v164_v29, %v148_v16  ;;  %v195_v38 = vmul.f32 0.3263181, %v191_v23  ;;  %s332_s22 = sshll.u32 %s580_s21, 4 }
  0x3b   : > { %v188_v28 = vadd.f32 %v180_v21, %v169_v24  ;;  %v197_v31 = vmul.f32 0.3473638, %v189_v26  ;;  %v193_v33 = vmul.f32 0.3263181, %v189_v26  ;;  %s140_s25 = scalar_lea.vmem %s571_s1, %s332_s22 }
  0x3c   : > { %210 = vrot.lane.b32.xlu1 %v199_v27, %s445_s15  ;;  %v190_v35 = vadd.f32 %v183_v30, %v171_v32 }
  0x3d   : > { %206 = vrot.lane.b32.xlu0 %v197_v31, %s445_s15  ;;  %v196_v34 = vmul.f32 0.3473638, %v188_v28  ;;  %v192_v37 = vmul.f32 0.3263181, %v188_v28 }
  0x3e   : > { %v198_v36 = vmul.f32 0.3473638, %v190_v35  ;;  %v194_v39 = vmul.f32 0.3263181, %v190_v35 }
  0x40   : > { %226 = vrot.lane.b32.xlu1 %v193_v33, %s446_s20 }
  0x41   : > { %204 = vrot.lane.b32.xlu0 %v196_v34, %s445_s15 }
  0x44   : > { %208 = vrot.lane.b32.xlu1 %v198_v36, %s445_s15 }
  0x45   : > { %224 = vrot.lane.b32.xlu0 %v192_v37, %s446_s20 }
  0x48   : > { %230 = vrot.lane.b32.xlu1 %v195_v38, %s446_s20 }
  0x49   : > { %228 = vrot.lane.b32.xlu0 %v194_v39, %s446_s20 }
  0xae   : > { %v211_v40 = vpop.permute.xlu1 %210 }
  0xaf   : > { %v207_v41 = vpop.permute.xlu0 %206  ;;  %v219_v50 = vadd.f32 %v211_v40, %v195_v38 }
  0xb0   : > { %v217_v42 = vadd.f32 %v207_v41, %v193_v33 }
  0xb2   : > { %v227_v43 = vpop.permute.xlu1 %226 }
  0xb3   : > { %v237_v44 = vadd.f32 %v227_v43, %v217_v42  ;;  %v205_v45 = vpop.permute.xlu0 %204 }
  0xb4   : > { %v216_v46 = vadd.f32 %v205_v45, %v192_v37 }
  0xb5   : > { %243 = vst.msk [vmem:[%s140_s25 + $0x8] sm:$0x3f] %vm242_vm2, %v237_v44 }
  0xb6   : > { %v209_v47 = vpop.permute.xlu1 %208 }
  0xb7   : > { %v225_v48 = vpop.permute.xlu0 %224  ;;  %v218_v51 = vadd.f32 %v209_v47, %v194_v39 }
  0xb8   : > { %v236_v49 = vadd.f32 %v225_v48, %v216_v46 }
  0xba   : > { %241 = vst.msk [vmem:[%s140_s25] sm:$0xff] %vm240_vm3, %v236_v49  ;;  %v231_v52 = vpop.permute.xlu1 %230 }
  0xbb   : > { %v239_v53 = vadd.f32 %v231_v52, %v219_v50  ;;  %v229_v54 = vpop.permute.xlu0 %228 }
  0xbc   : > { %v238_v55 = vadd.f32 %v229_v54, %v218_v51 }
  0xbd   : > { %245 = vst.msk [vmem:[%s140_s25 + $0x18] sm:$0x3f] %vm242_vm2, %v239_v53 }
  0xbe   : > { %244 = vst.msk [vmem:[%s140_s25 + $0x10] sm:$0xff] %vm240_vm3, %v238_v55 }
  0xbf PF: > { %p11_p8 = scmp.ge.s32.totalorder %s477_s11, 6   ;;  %s575_s6 = smov %s432_s7 }
  0xc0   : > { %s576_s7 = smov %s436_s8  ;;  %s577_s8 = smov %s487_s14 }
  0xc1   : > { %s578_s9 = smov %s477_s11  ;;  %13 = sbr.rel (!%p11_p8) target bundleno = 3 (0x3), region = 64 }
  0xc8   :  { %270 = vsyncpa [#allocation3], 1 }
  0xc9   :  { %272 = vsyncpa [#allocation3 + $0x1], 1 }

</bundles_post_ra>
